<compile_context>
chip_gen: v7x
topology: tpu7x:2x2x1
jax: 0.10.0
libtpu: 0.0.40
codegen_flags: <defaults>
</compile_context>

<pallas_src>
import jax
import jax.numpy as jnp
import numpy as np
from jax.experimental import pallas as pl
from jax.experimental.pallas import tpu as pltpu

EPS = 0.001                 # Online_SRNN_GLN_Cell passes eps=0.001 to MultiClassGLN
BIAS_TERM = 1.0 - EPS
HALF_SPACES = 2             # halfspaces=2 in Online_SRNN_GLN_Cell


# ----------------------------- Pallas kernel ------------------------------ #
def _srnn_gln_kernel(x_ref, h_ref,
                     wf_ref,                # fused weight [2D+1, 4C+2C+H] (biases folded)
                     wfch_ref, bfch_ref,    # fc_h: [C,H], [1,H]
                     out_ref, hid_ref):     # outputs tile [TN,H], hidden [1,H] (resident carry)
    TN = x_ref.shape[0]
    C = wfch_ref.shape[0]                   # n_classes
    H = out_ref.shape[1]

    x = x_ref[...]                                        # raw side-info z: [TN, D]
    xc = jnp.clip(x, EPS, 1.0 - EPS)                      # GLN.base_predictions
    logit_x = jnp.log(xc / (1.0 - xc))                    # logit(x)

    # Single fused MXU push: [logit_x | x | 1] @ W_fused  -> [TN, 4C + 2C + H]
    #   cols [0:4C)    : GLN layer logits y (per halfspace config j, col = j*C + c)
    #   cols [4C:6C)   : gate values (col = i*C + c)
    #   cols [6C:6C+H) : fc2 pre-activation
    ones = jnp.ones((TN, 1), jnp.float32)
    fused_in = jnp.concatenate([logit_x, x, ones], axis=1)            # [TN, 2D+1]
    r = jnp.dot(fused_in, wf_ref[...], preferred_element_type=jnp.float32)

    y = r[:, 0:4 * C]
    gv = r[:, 4 * C:6 * C]
    alpha = jax.nn.sigmoid(r[:, 6 * C:6 * C + H])                     # multihead gate [TN, H]

    # Halfspace select straight from the gate signs (choice = bit0 + 2*bit1).
    g0 = gv[:, 0:C] > 0
    g1 = gv[:, C:2 * C] > 0
    y0 = y[:, 0 * C:1 * C]
    y1 = y[:, 1 * C:2 * C]
    y2 = y[:, 2 * C:3 * C]
    y3 = y[:, 3 * C:4 * C]
    lo = jnp.where(g0, y1, y0)
    hi = jnp.where(g0, y3, y2)
    y_sel = jnp.where(g1, hi, lo)                                     # [TN, C]

    probs = jnp.clip(jax.nn.sigmoid(y_sel), EPS, 1.0 - EPS)           # GLN output probs

    # fc_h + multihead gating; bmod stays in vregs (no scratch round-trip).
    b = jnp.dot(probs, wfch_ref[...], preferred_element_type=jnp.float32) + bfch_ref[...]
    bmod = b * alpha                                                  # [TN, H]

    # Hidden carry lives in the resident hidden output block.
    @pl.when(pl.program_id(0) == 0)
    def _():
        hid_ref[...] = h_ref[...]

    # Unrolled sequential recurrence: o_i = relu(b_i + roll(o_{i-1}, 1, -1)).
    prev = hid_ref[...]                                               # [1, H]
    rows = []
    for i in range(TN):                                               # static unroll
        prev = jnp.maximum(bmod[i:i + 1, :] + pltpu.roll(prev, shift=1, axis=1), 0.0)
        rows.append(prev)
    out_ref[...] = jnp.concatenate(rows, axis=0)                      # one batched tile store
    hid_ref[...] = prev


# ------------------------------- wrapper ---------------------------------- #
def _pick_tile(n):
    # Cap the tile so the statically-unrolled recurrence stays small; the grid
    # pipelines tiles (double-buffered x / out DMA) for long sequences.
    for t in (32, 16, 8):
        if n >= t and n % t == 0:
            return t
    return n


def online_srnn_gln_forward(x, params, hidden=None):
    """x: [1, seq_len, D] (or [seq_len, D]). Returns (outputs [1,seq,H], hidden [1,H])."""
    if x.ndim == 3:
        assert x.shape[0] == 1, "Online model works with batch size of 1"
        x = x[0]
    x = x.astype(jnp.float32)
    N, D = x.shape
    H = params["bfch"].shape[1]
    if hidden is None:
        hidden = jnp.zeros((1, H), jnp.float32)

    TN = _pick_tile(N)
    grid = (N // TN,)

    w_fused = params["w_fused"]
    wfch = params["wfch"]
    bfch = params["bfch"]

    def resident(shape):
        return pl.BlockSpec(shape, lambda i: (0, 0))

    out, hid = pl.pallas_call(
        _srnn_gln_kernel,
        out_shape=(jax.ShapeDtypeStruct((N, H), jnp.float32),
                   jax.ShapeDtypeStruct((1, H), jnp.float32)),
        grid_spec=pltpu.PrefetchScalarGridSpec(
            num_scalar_prefetch=0,
            grid=grid,
            in_specs=[
                pl.BlockSpec((TN, D), lambda i: (i, 0)),      # x, tiled over the sequence
                resident((1, H)),                             # initial hidden
                resident(w_fused.shape),                      # fused weight (stays resident)
                resident(wfch.shape),
                resident(bfch.shape),
            ],
            out_specs=[
                pl.BlockSpec((TN, H), lambda i: (i, 0)),      # outputs tile
                resident((1, H)),                             # hidden (resident carry)
            ],
        ),
        compiler_params=pltpu.CompilerParams(
            dimension_semantics=("arbitrary",)),              # sequential carry over tiles
    )(x, hidden, w_fused, wfch, bfch)

    outputs = out[None]      # [1, seq_len, H]; module's squeeze(2) is a no-op for H > 1
    return outputs, hid


# ----------------------- deterministic parameter init --------------------- #
def init_params(key, D, C, H):
    """num_layers=1, hyper_size=D (required by the module for a 1-layer GLN)."""
    keys = jax.random.split(key, 7)
    # GLN Layer per class: num_side=D, num_inputs=D, num_outputs=1, half_spaces=2.
    # Module fills weights with 1/(D+1); a tiny deterministic perturbation is added
    # so the halfspace gating path is numerically observable in the check.
    gln_w = jnp.full((C, 2 ** HALF_SPACES, D + 1), 1.0 / (D + 1), jnp.float32)
    gln_w = gln_w + 0.01 * jax.random.normal(keys[6], gln_w.shape, jnp.float32)
    gln_gw = jax.random.normal(keys[0], (C, HALF_SPACES, D), jnp.float32)
    gln_gw = gln_gw / jnp.sqrt(jnp.sum(gln_gw ** 2, axis=-1, keepdims=True))
    gln_gb = jax.random.normal(keys[1], (C, HALF_SPACES), jnp.float32)
    fc_h_w = 0.1 * jax.random.normal(keys[2], (H, C), jnp.float32)
    fc_h_b = 0.1 * jax.random.normal(keys[3], (H,), jnp.float32)
    fc2_w = 0.1 * jax.random.normal(keys[4], (H, D), jnp.float32)
    fc2_b = 0.1 * jax.random.normal(keys[5], (H,), jnp.float32)

    # --- packed layouts for the kernel ---
    # GLN main weights: col = j*C + c, split into logit(x) rows and the bias row.
    wg = jnp.transpose(gln_w, (2, 1, 0))                       # [D+1, 4, C]
    wg_main = wg[:D].reshape(D, (2 ** HALF_SPACES) * C)        # [D, 4C]
    wg_bias = wg[D].reshape(1, (2 ** HALF_SPACES) * C)         # [1, 4C]
    # GLN gates: col = i*C + c.
    gw = jnp.transpose(gln_gw, (2, 1, 0)).reshape(D, HALF_SPACES * C)   # [D, 2C]
    gb = jnp.transpose(gln_gb, (1, 0)).reshape(1, HALF_SPACES * C)      # [1, 2C]

    # Fused block-diagonal weight for a single MXU push with the biases folded in.
    # Rows:   [0:D)   -> logit(x)   |   [D:2D) -> x   |   row 2D -> constant 1
    # Cols:   [0:4C) GLN logits, [4C:6C) gate values, [6C:6C+H) fc2 pre-activation.
    bias_logit = float(np.log(BIAS_TERM / (1.0 - BIAS_TERM)))
    w_fused = jnp.zeros((2 * D + 1, 6 * C + H), jnp.float32)
    w_fused = w_fused.at[0:D, 0:4 * C].set(wg_main)
    w_fused = w_fused.at[D:2 * D, 4 * C:6 * C].set(gw)
    w_fused = w_fused.at[D:2 * D, 6 * C:].set(fc2_w.T)
    w_fused = w_fused.at[2 * D, 0:4 * C].set(bias_logit * wg_bias[0])
    w_fused = w_fused.at[2 * D, 4 * C:6 * C].set(gb[0])
    w_fused = w_fused.at[2 * D, 6 * C:].set(fc2_b)

    return dict(
        gln_w=gln_w, gln_gw=gln_gw, gln_gb=gln_gb,
        fc_h_w=fc_h_w, fc_h_b=fc_h_b, fc2_w=fc2_w, fc2_b=fc2_b,
        w_fused=w_fused,
        wfch=fc_h_w.T, bfch=fc_h_b[None, :],
    )


# ------------------------------ pure-JAX reference ------------------------ #
def reference_forward(x, params, hidden=None):
    N, _ = x.shape
    C = params["gln_w"].shape[0]
    xc = jnp.clip(x, EPS, 1.0 - EPS)
    bias_logit = jnp.log(jnp.float32(BIAS_TERM) / jnp.float32(1.0 - BIAS_TERM))
    logit_full = jnp.concatenate(
        [jnp.log(xc / (1.0 - xc)), jnp.full((N, 1), bias_logit, jnp.float32)], axis=1)
    probs = []
    for c in range(C):
        y = logit_full @ params["gln_w"][c].T
        gv = x @ params["gln_gw"][c].T + params["gln_gb"][c]
        choice = (gv[:, 0] > 0).astype(jnp.int32) + 2 * (gv[:, 1] > 0).astype(jnp.int32)
        y_sel = jnp.take_along_axis(y, choice[:, None], axis=1)[:, 0]
        probs.append(jnp.clip(jax.nn.sigmoid(y_sel), EPS, 1.0 - EPS))
    b = jnp.stack(probs, axis=1)
    b = b @ params["fc_h_w"].T + params["fc_h_b"]
    alpha = jax.nn.sigmoid(x @ params["fc2_w"].T + params["fc2_b"])
    bmod = b * alpha
    prev = hidden if hidden is not None else jnp.zeros((1, bmod.shape[1]), jnp.float32)
    outs = []
    for i in range(N):
        prev = jnp.maximum(bmod[i][None, :] + jnp.roll(prev, 1, axis=-1), 0.0)
        outs.append(prev)
    outputs = jnp.concatenate(outs, axis=0)[None]
    return outputs, prev


if __name__ == "__main__":
    input_size = 16     # D; with num_layers=1 the module requires hyper_size == input_size
    hidden_size = 32    # H
    n_classes = 4       # C
    seq_len = 8

    key = jax.random.PRNGKey(0)
    k_params, k_x = jax.random.split(key)
    params = init_params(k_params, input_size, n_classes, hidden_size)
    # inputs are probabilities for the GLN; uniform(0,1) then clamped inside.
    x = jax.random.uniform(k_x, (1, seq_len, input_size), jnp.float32)

    outputs, hidden = online_srnn_gln_forward(x, params, hidden=None)
    jax.block_until_ready((outputs, hidden))

    ref_out, ref_hid = reference_forward(x[0], params, hidden=None)
    np.testing.assert_allclose(np.asarray(outputs), np.asarray(ref_out), rtol=1e-4, atol=1e-4)
    np.testing.assert_allclose(np.asarray(hidden), np.asarray(ref_hid), rtol=1e-4, atol=1e-4)
    print("KERNEL_OK")
</pallas_src>

<mosaic_0001>
module attributes {stable_mosaic.version = 11 : i64} {
  func.func @_srnn_gln_kernel(%arg0: i32, %arg1: memref<8x16xf32, #tpu.memory_space<vmem>>, %arg2: memref<1x32xf32, #tpu.memory_space<vmem>>, %arg3: memref<33x56xf32, #tpu.memory_space<vmem>>, %arg4: memref<4x32xf32, #tpu.memory_space<vmem>>, %arg5: memref<1x32xf32, #tpu.memory_space<vmem>>, %arg6: memref<8x32xf32, #tpu.memory_space<vmem>>, %arg7: memref<1x32xf32, #tpu.memory_space<vmem>>) attributes {dimension_semantics = [#tpu.dimension_semantics<arbitrary>], iteration_bounds = array<i64: 1>, scalar_prefetch = 0 : i64, scratch_operands = 0 : i64, tpu.core_type = #tpu.core_type<tc>, window_params = [{transform_indices = @transform_0, window_bounds = array<i64: 8, 16>}, {pipeline_mode = #tpu.pipeline_mode<synchronous>, transform_indices = @transform_1, window_bounds = array<i64: 1, 32>}, {pipeline_mode = #tpu.pipeline_mode<synchronous>, transform_indices = @transform_2, window_bounds = array<i64: 33, 56>}, {pipeline_mode = #tpu.pipeline_mode<synchronous>, transform_indices = @transform_3, window_bounds = array<i64: 4, 32>}, {pipeline_mode = #tpu.pipeline_mode<synchronous>, transform_indices = @transform_4, window_bounds = array<i64: 1, 32>}, {transform_indices = @transform_5, window_bounds = array<i64: 8, 32>}, {pipeline_mode = #tpu.pipeline_mode<synchronous>, transform_indices = @transform_6, window_bounds = array<i64: 1, 32>}]} {
    %c0 = arith.constant 0 : index
    %c0_0 = arith.constant 0 : index
    %0 = vector.load %arg1[%c0, %c0_0] : memref<8x16xf32, #tpu.memory_space<vmem>>, vector<8x16xf32>
    %cst = arith.constant 1.000000e-03 : f32
    %cst_1 = arith.constant 9.990000e-01 : f32
    %1 = vector.broadcast %cst : f32 to vector<8x16xf32>
    %2 = arith.maximumf %1, %0 : vector<8x16xf32>
    %3 = vector.broadcast %cst_1 : f32 to vector<8x16xf32>
    %4 = arith.minimumf %3, %2 : vector<8x16xf32>
    %cst_2 = arith.constant 1.000000e+00 : f32
    %5 = vector.broadcast %cst_2 : f32 to vector<8x16xf32>
    %6 = arith.subf %5, %4 : vector<8x16xf32>
    %7 = arith.divf %4, %6 : vector<8x16xf32>
    %8 = math.log %7 : vector<8x16xf32>
    %cst_3 = arith.constant 1.000000e+00 : f32
    %9 = vector.broadcast %cst_3 : f32 to vector<8x1xf32>
    %10 = tpu.concatenate %8, %0, %9 in 1 : vector<8x16xf32>, vector<8x16xf32>, vector<8x1xf32> -> vector<8x33xf32>
    %c0_4 = arith.constant 0 : index
    %c0_5 = arith.constant 0 : index
    %11 = vector.load %arg3[%c0_4, %c0_5] : memref<33x56xf32, #tpu.memory_space<vmem>>, vector<33x56xf32>
    %cst_6 = arith.constant dense<0.000000e+00> : vector<8x56xf32>
    %12 = tpu.matmul %10, %11, %cst_6 {dimension_numbers = #tpu.dot_dimension_numbers<[1], [0], [0], [1], [0, 0, 1, 1], [], []>} : vector<8x33xf32>, vector<33x56xf32>, vector<8x56xf32> -> vector<8x56xf32>
    %13 = vector.extract_strided_slice %12 {offsets = [0, 0], sizes = [8, 16], strides = [1, 1]} : vector<8x56xf32> to vector<8x16xf32>
    %14 = vector.extract_strided_slice %12 {offsets = [0, 16], sizes = [8, 8], strides = [1, 1]} : vector<8x56xf32> to vector<8x8xf32>
    %15 = vector.extract_strided_slice %12 {offsets = [0, 24], sizes = [8, 32], strides = [1, 1]} : vector<8x56xf32> to vector<8x32xf32>
    %16 = arith.negf %15 : vector<8x32xf32>
    %17 = math.exp %16 : vector<8x32xf32>
    %cst_7 = arith.constant 1.000000e+00 : f32
    %18 = vector.broadcast %cst_7 : f32 to vector<8x32xf32>
    %19 = arith.addf %18, %17 : vector<8x32xf32>
    %20 = arith.divf %18, %19 : vector<8x32xf32>
    %21 = vector.extract_strided_slice %14 {offsets = [0, 0], sizes = [8, 4], strides = [1, 1]} : vector<8x8xf32> to vector<8x4xf32>
    %cst_8 = arith.constant 0.000000e+00 : f32
    %22 = vector.broadcast %cst_8 : f32 to vector<8x4xf32>
    %23 = arith.cmpf ogt, %21, %22 : vector<8x4xf32>
    %24 = vector.extract_strided_slice %14 {offsets = [0, 4], sizes = [8, 4], strides = [1, 1]} : vector<8x8xf32> to vector<8x4xf32>
    %cst_9 = arith.constant 0.000000e+00 : f32
    %25 = vector.broadcast %cst_9 : f32 to vector<8x4xf32>
    %26 = arith.cmpf ogt, %24, %25 : vector<8x4xf32>
    %27 = vector.extract_strided_slice %13 {offsets = [0, 0], sizes = [8, 4], strides = [1, 1]} : vector<8x16xf32> to vector<8x4xf32>
    %28 = vector.extract_strided_slice %13 {offsets = [0, 4], sizes = [8, 4], strides = [1, 1]} : vector<8x16xf32> to vector<8x4xf32>
    %29 = vector.extract_strided_slice %13 {offsets = [0, 8], sizes = [8, 4], strides = [1, 1]} : vector<8x16xf32> to vector<8x4xf32>
    %30 = vector.extract_strided_slice %13 {offsets = [0, 12], sizes = [8, 4], strides = [1, 1]} : vector<8x16xf32> to vector<8x4xf32>
    %31 = arith.select %23, %28, %27 : vector<8x4xi1>, vector<8x4xf32>
    %32 = arith.select %23, %30, %29 : vector<8x4xi1>, vector<8x4xf32>
    %33 = arith.select %26, %32, %31 : vector<8x4xi1>, vector<8x4xf32>
    %34 = arith.negf %33 : vector<8x4xf32>
    %35 = math.exp %34 : vector<8x4xf32>
    %cst_10 = arith.constant 1.000000e+00 : f32
    %36 = vector.broadcast %cst_10 : f32 to vector<8x4xf32>
    %37 = arith.addf %36, %35 : vector<8x4xf32>
    %38 = arith.divf %36, %37 : vector<8x4xf32>
    %cst_11 = arith.constant 1.000000e-03 : f32
    %cst_12 = arith.constant 9.990000e-01 : f32
    %39 = vector.broadcast %cst_11 : f32 to vector<8x4xf32>
    %40 = arith.maximumf %39, %38 : vector<8x4xf32>
    %41 = vector.broadcast %cst_12 : f32 to vector<8x4xf32>
    %42 = arith.minimumf %41, %40 : vector<8x4xf32>
    %c0_13 = arith.constant 0 : index
    %c0_14 = arith.constant 0 : index
    %43 = vector.load %arg4[%c0_13, %c0_14] : memref<4x32xf32, #tpu.memory_space<vmem>>, vector<4x32xf32>
    %cst_15 = arith.constant dense<0.000000e+00> : vector<8x32xf32>
    %44 = tpu.matmul %42, %43, %cst_15 {dimension_numbers = #tpu.dot_dimension_numbers<[1], [0], [0], [1], [0, 0, 1, 1], [], []>} : vector<8x4xf32>, vector<4x32xf32>, vector<8x32xf32> -> vector<8x32xf32>
    %c0_16 = arith.constant 0 : index
    %c0_17 = arith.constant 0 : index
    %45 = vector.load %arg5[%c0_16, %c0_17] : memref<1x32xf32, #tpu.memory_space<vmem>>, vector<1x32xf32>
    %46 = vector.broadcast %45 : vector<1x32xf32> to vector<8x32xf32>
    %47 = arith.addf %44, %46 : vector<8x32xf32>
    %48 = arith.mulf %47, %20 : vector<8x32xf32>
    %c0_i32 = arith.constant 0 : i32
    %49 = arith.cmpi eq, %arg0, %c0_i32 : i32
    %50 = arith.extui %49 : i1 to i32
    %c0_i32_18 = arith.constant 0 : i32
    %51 = arith.cmpi ne, %50, %c0_i32_18 : i32
    scf.if %51 {
      %c0_40 = arith.constant 0 : index
      %c0_41 = arith.constant 0 : index
      %96 = vector.load %arg2[%c0_40, %c0_41] : memref<1x32xf32, #tpu.memory_space<vmem>>, vector<1x32xf32>
      %c0_42 = arith.constant 0 : index
      %c0_43 = arith.constant 0 : index
      %97 = vector.load %arg7[%c0_42, %c0_43] : memref<1x32xf32, #tpu.memory_space<vmem>>, vector<1x32xf32>
      tpu.vector_store %arg7[%c0_42, %c0_43], %96 {strides = array<i32>} : memref<1x32xf32, #tpu.memory_space<vmem>>, vector<1x32xf32>,
    } else {
    }
    %c0_19 = arith.constant 0 : index
    %c0_20 = arith.constant 0 : index
    %52 = vector.load %arg7[%c0_19, %c0_20] : memref<1x32xf32, #tpu.memory_space<vmem>>, vector<1x32xf32>
    %53 = vector.extract_strided_slice %48 {offsets = [0, 0], sizes = [1, 32], strides = [1, 1]} : vector<8x32xf32> to vector<1x32xf32>
    %c1_i32 = arith.constant 1 : i32
    %54 = tpu.dynamic_rotate %52 by %c1_i32 dim 1 : vector<1x32xf32>, i32 -> vector<1x32xf32>
    %55 = arith.addf %53, %54 : vector<1x32xf32>
    %cst_21 = arith.constant 0.000000e+00 : f32
    %56 = vector.broadcast %cst_21 : f32 to vector<1x32xf32>
    %57 = arith.maximumf %55, %56 : vector<1x32xf32>
    %58 = vector.extract_strided_slice %48 {offsets = [1, 0], sizes = [1, 32], strides = [1, 1]} : vector<8x32xf32> to vector<1x32xf32>
    %c1_i32_22 = arith.constant 1 : i32
    %59 = tpu.dynamic_rotate %57 by %c1_i32_22 dim 1 : vector<1x32xf32>, i32 -> vector<1x32xf32>
    %60 = arith.addf %58, %59 : vector<1x32xf32>
    %cst_23 = arith.constant 0.000000e+00 : f32
    %61 = vector.broadcast %cst_23 : f32 to vector<1x32xf32>
    %62 = arith.maximumf %60, %61 : vector<1x32xf32>
    %63 = vector.extract_strided_slice %48 {offsets = [2, 0], sizes = [1, 32], strides = [1, 1]} : vector<8x32xf32> to vector<1x32xf32>
    %c1_i32_24 = arith.constant 1 : i32
    %64 = tpu.dynamic_rotate %62 by %c1_i32_24 dim 1 : vector<1x32xf32>, i32 -> vector<1x32xf32>
    %65 = arith.addf %63, %64 : vector<1x32xf32>
    %cst_25 = arith.constant 0.000000e+00 : f32
    %66 = vector.broadcast %cst_25 : f32 to vector<1x32xf32>
    %67 = arith.maximumf %65, %66 : vector<1x32xf32>
    %68 = vector.extract_strided_slice %48 {offsets = [3, 0], sizes = [1, 32], strides = [1, 1]} : vector<8x32xf32> to vector<1x32xf32>
    %c1_i32_26 = arith.constant 1 : i32
    %69 = tpu.dynamic_rotate %67 by %c1_i32_26 dim 1 : vector<1x32xf32>, i32 -> vector<1x32xf32>
    %70 = arith.addf %68, %69 : vector<1x32xf32>
    %cst_27 = arith.constant 0.000000e+00 : f32
    %71 = vector.broadcast %cst_27 : f32 to vector<1x32xf32>
    %72 = arith.maximumf %70, %71 : vector<1x32xf32>
    %73 = vector.extract_strided_slice %48 {offsets = [4, 0], sizes = [1, 32], strides = [1, 1]} : vector<8x32xf32> to vector<1x32xf32>
    %c1_i32_28 = arith.constant 1 : i32
    %74 = tpu.dynamic_rotate %72 by %c1_i32_28 dim 1 : vector<1x32xf32>, i32 -> vector<1x32xf32>
    %75 = arith.addf %73, %74 : vector<1x32xf32>
    %cst_29 = arith.constant 0.000000e+00 : f32
    %76 = vector.broadcast %cst_29 : f32 to vector<1x32xf32>
    %77 = arith.maximumf %75, %76 : vector<1x32xf32>
    %78 = vector.extract_strided_slice %48 {offsets = [5, 0], sizes = [1, 32], strides = [1, 1]} : vector<8x32xf32> to vector<1x32xf32>
    %c1_i32_30 = arith.constant 1 : i32
    %79 = tpu.dynamic_rotate %77 by %c1_i32_30 dim 1 : vector<1x32xf32>, i32 -> vector<1x32xf32>
    %80 = arith.addf %78, %79 : vector<1x32xf32>
    %cst_31 = arith.constant 0.000000e+00 : f32
    %81 = vector.broadcast %cst_31 : f32 to vector<1x32xf32>
    %82 = arith.maximumf %80, %81 : vector<1x32xf32>
    %83 = vector.extract_strided_slice %48 {offsets = [6, 0], sizes = [1, 32], strides = [1, 1]} : vector<8x32xf32> to vector<1x32xf32>
    %c1_i32_32 = arith.constant 1 : i32
    %84 = tpu.dynamic_rotate %82 by %c1_i32_32 dim 1 : vector<1x32xf32>, i32 -> vector<1x32xf32>
    %85 = arith.addf %83, %84 : vector<1x32xf32>
    %cst_33 = arith.constant 0.000000e+00 : f32
    %86 = vector.broadcast %cst_33 : f32 to vector<1x32xf32>
    %87 = arith.maximumf %85, %86 : vector<1x32xf32>
    %88 = vector.extract_strided_slice %48 {offsets = [7, 0], sizes = [1, 32], strides = [1, 1]} : vector<8x32xf32> to vector<1x32xf32>
    %c1_i32_34 = arith.constant 1 : i32
    %89 = tpu.dynamic_rotate %87 by %c1_i32_34 dim 1 : vector<1x32xf32>, i32 -> vector<1x32xf32>
    %90 = arith.addf %88, %89 : vector<1x32xf32>
    %cst_35 = arith.constant 0.000000e+00 : f32
    %91 = vector.broadcast %cst_35 : f32 to vector<1x32xf32>
    %92 = arith.maximumf %90, %91 : vector<1x32xf32>
    %93 = tpu.concatenate %57, %62, %67, %72, %77, %82, %87, %92 in 0 : vector<1x32xf32>, vector<1x32xf32>, vector<1x32xf32>, vector<1x32xf32>, vector<1x32xf32>, vector<1x32xf32>, vector<1x32xf32>, vector<1x32xf32> -> vector<8x32xf32>
    %c0_36 = arith.constant 0 : index
    %c0_37 = arith.constant 0 : index
    %94 = vector.load %arg6[%c0_36, %c0_37] : memref<8x32xf32, #tpu.memory_space<vmem>>, vector<8x32xf32>
    tpu.vector_store %arg6[%c0_36, %c0_37], %93 {strides = array<i32>} : memref<8x32xf32, #tpu.memory_space<vmem>>, vector<8x32xf32>,
    %c0_38 = arith.constant 0 : index
    %c0_39 = arith.constant 0 : index
    %95 = vector.load %arg7[%c0_38, %c0_39] : memref<1x32xf32, #tpu.memory_space<vmem>>, vector<1x32xf32>
    tpu.vector_store %arg7[%c0_38, %c0_39], %92 {strides = array<i32>} : memref<1x32xf32, #tpu.memory_space<vmem>>, vector<1x32xf32>,
    return
  }
  func.func @transform_0(%arg0: i32) -> (i32, i32) {
    %c0_i32 = arith.constant 0 : i32
    %c0_i32_0 = arith.constant 0 : i32
    return %arg0, %c0_i32 : i32, i32
  }
  func.func @transform_1(%arg0: i32) -> (i32, i32) {
    %c0_i32 = arith.constant 0 : i32
    %c0_i32_0 = arith.constant 0 : i32
    %c0_i32_1 = arith.constant 0 : i32
    return %c0_i32, %c0_i32_0 : i32, i32
  }
  func.func @transform_2(%arg0: i32) -> (i32, i32) {
    %c0_i32 = arith.constant 0 : i32
    %c0_i32_0 = arith.constant 0 : i32
    %c0_i32_1 = arith.constant 0 : i32
    return %c0_i32, %c0_i32_0 : i32, i32
  }
  func.func @transform_3(%arg0: i32) -> (i32, i32) {
    %c0_i32 = arith.constant 0 : i32
    %c0_i32_0 = arith.constant 0 : i32
    %c0_i32_1 = arith.constant 0 : i32
    return %c0_i32, %c0_i32_0 : i32, i32
  }
  func.func @transform_4(%arg0: i32) -> (i32, i32) {
    %c0_i32 = arith.constant 0 : i32
    %c0_i32_0 = arith.constant 0 : i32
    %c0_i32_1 = arith.constant 0 : i32
    return %c0_i32, %c0_i32_0 : i32, i32
  }
  func.func @transform_5(%arg0: i32) -> (i32, i32) {
    %c0_i32 = arith.constant 0 : i32
    %c0_i32_0 = arith.constant 0 : i32
    return %arg0, %c0_i32 : i32, i32
  }
  func.func @transform_6(%arg0: i32) -> (i32, i32) {
    %c0_i32 = arith.constant 0 : i32
    %c0_i32_0 = arith.constant 0 : i32
    %c0_i32_1 = arith.constant 0 : i32
    return %c0_i32, %c0_i32_0 : i32, i32
  }
}

</mosaic_0001>

<bundles_post_ra>
// kernel: tpu_custom_call.1
= control target key start
LH: loop header
LB: loop body
LE: loop exit
PB: predicated region body
PF: predicated region fallthrough
CT: control target
= control target key end

     0   :  { %12 = vsyncpa [#allocation3], 0  ;;  %s804_s0 = inlined_call_operand.hbm [shape: f32[8,16], index: 0, kind: input, shape index: {}]   ;;  %s805_s1 = inlined_call_operand.vmem [shape: f32[1,32], index: 1, kind: input, shape index: {}]   ;;  %s806_s2 = inlined_call_operand.hbm [shape: f32[33,56], index: 2, kind: input, shape index: {}]   ;;  %s807_s3 = inlined_call_operand.vmem [shape: f32[4,32], index: 3, kind: input, shape index: {}]   ;;  %s808_s4 = inlined_call_operand.vmem [shape: f32[1,32], index: 4, kind: input, shape index: {}]   ;;  %s809_s5 = inlined_call_operand.hbm [shape: f32[8,32], index: 5, kind: output, shape index: {0}]   ;;  %s810_s6 = inlined_call_operand.hbm [shape: f32[1,32], index: 6, kind: output, shape index: {1}]  }
   0x1   :  { %13 = vsyncpa [#allocation6], 0 }
   0x2   :  { %14 = vsyncpa [#allocation4], 0 }
   0x3   :  { %15 = vsyncpa [#allocation9], 0  ;;  %s619_s21 = smov [#allocation2]   ;;  %s620_s23 = smov [#allocation5]  }
   0x4   :  { %s22_s22 = sshll.u32 %s619_s21, 4  ;;  %s33_s24 = sshll.u32 %s620_s23, 4  ;;  %s23_s22 = int_to_ptr.vmem [resolvable:$true] %s22_s22  ;;  %s670_s24 = int_to_ptr.vmem [resolvable:$true] %s33_s24 }
   0x5   :  { %s523_s27 = scalar_lea.hbm %s804_s0, 128 }
   0x6   :  { %p524_p0 = scmp.ne.s32.totalorder %s804_s0, %s523_s27  ;;  %p527_p1 = scmp.lt.u32.totalorder %s523_s27, %s804_s0 }
   0x8   :  { %p529_p2 = pnand %p527_p1, %p524_p0 }
   0xa   :  { %532 = shalt.err (!%p529_p2)
}
   0xb   :  { %s533_s8 = scalar_lea.vmem %s23_s22, 128  ;;  %p538_p4 = scmp.lt.s32.totalorder %s23_s22, %s23_s22 }
   0xc   :  { %p534_p3 = scmp.ne.s32.totalorder %s23_s22, %s533_s8  ;;  %p539_p5 = scmp.lt.s32.totalorder %s533_s8, %s533_s8 }
   0xe   :  { %p540_p6 = por %p539_p5, %p538_p4 }
  0x10   :  { %p541_p7 = pnand %p540_p6, %p534_p3 }
  0x12   :  { %544 = shalt.err (!%p541_p7)
}
  0x13   :  { %25 = dma.hbm_to_vmem [thread:$0]  %s804_s0, 128, %s23_s22, [#allocation3]  }
  0x14   :  { %s545_s13 = scalar_lea.hbm %s806_s2, 640 }
  0x15   :  { %p546_p8 = scmp.ne.s32.totalorder %s806_s2, %s545_s13  ;;  %p549_p9 = scmp.lt.u32.totalorder %s545_s13, %s806_s2 }
  0x17   :  { %p551_p10 = pnand %p549_p9, %p546_p8 }
  0x19   :  { %554 = shalt.err (!%p551_p10)
}
  0x1a   :  { %s555_s18 = scalar_lea.vmem %s670_s24, 640  ;;  %p560_p12 = scmp.lt.s32.totalorder %s670_s24, %s670_s24 }
  0x1b   :  { %p556_p11 = scmp.ne.s32.totalorder %s670_s24, %s555_s18  ;;  %p561_p13 = scmp.lt.s32.totalorder %s555_s18, %s555_s18 }
  0x1d   :  { %p562_p0 = por %p561_p13, %p560_p12 }
  0x1f   :  { %p563_p1 = pnand %p562_p0, %p556_p11 }
  0x21   :  { %566 = shalt.err (!%p563_p1)
}
  0x22   :  { %s621_s0 = smov 128   ;;  %s622_s19 = smov 8  }
  0x23   :  { %39 = dma.hbm_to_vmem [thread:$0]  %s806_s2, 640, %s670_s24, [#allocation6], %s621_s0, %s621_s0, %s622_s19  }
  0x24   :  { %611 = dma.done.wait [#allocation3], 128  }
  0x25   :  { %612 = vsyncadd [#allocation3], 4294967168 }
  0x26   :  { %613 = dma.done.wait [#allocation6], 640  }
  0x27   :  { %614 = vsyncadd [#allocation6], 4294966656  ;;  %v623_v0 = vmov 0.0|0.0   ;;  %vm624_vm0 = vmmov 0   ;;  %v625_v1 = vmov 0.0   ;;  %v50_v2 = vld [vmem:[#allocation2] sm:$0xff] }
  0x28   :  { %489 = vmatprep.subr.bf16.mxu0 %v623_v0  ;;  %481 = vmatprep.mubr.msk.f32.mxu0 %vm624_vm0, %v625_v1  ;;  %v66_v3 = vld [vmem:[#allocation5] sm:$0xff]  ;;  %v67_v4 = vld [vmem:[#allocation5 + $0x8] sm:$0xff]  ;;  %s626_s22 = smov 16   ;;  %v68_v6 = vld [vmem:[#allocation5 + $0x10] sm:$0xff]  ;;  %vm75_vm1 = vcmask 1040384   ;;  %vm62_vm2 = vcmask 130048  }
  0x29   :  { %484 = vmatprep.subr.mxu1 %v625_v1  ;;  %486 = vmatprep.mubr.msk.f32.mxu1 %vm624_vm0, %v625_v1  ;;  %v490_v5 = vpack.c.bf16 %v67_v4, %v66_v3  ;;  %v69_v7 = vld [vmem:[#allocation5 + $0x18] sm:$0xff]  ;;  %v70_v9 = vld [vmem:[#allocation5 + $0x20] sm:$0x1]  ;;  %v51_v10 = vmax.f32 %v50_v2, 0.001  ;;  %vm64_vm3 = vcmask 261120  }
  0x2a   :  { %59 = vrot.lane.b32.xlu0 %v50_v2, %s626_s22  ;;  %v493_v8 = vpack.c.bf16 %v69_v7, %v68_v6  ;;  %vm71_vm4 = vcmask 269312   ;;  %v285_v20 = vld [vmem:[%s805_s1] sm:$0x1]  ;;  %vm286_vm5 = vcmask 253952   ;;  %s627_s24 = smov 12   ;;  %s628_s25 = smov 4  }
  0x2b   :  { %491 = vmatpush3.bf16.msra.mxu0 %v490_v5  ;;  %v52_v11 = vmin.f32 %v51_v10, 0.999  ;;  %287 = vst.msk [vmem:[#allocation8] sm:$0x1] %vm286_vm5, %v285_v20  ;;  %s629_s1 = smov 32   ;;  %s630_s26 = smov 104  }
  0x2c   :  { %492 = vmatprep.subr.bf16.mxu0 %v623_v0  ;;  %v188_v34 = vld [vmem:[%s807_s3] sm:$0xf]  ;;  %vm202_vm7 = vcmask 1043456   ;;  %vm289_vm8 = vcmask 1047808   ;;  %s631_s29 = smov 108   ;;  %vm199_vm9 = vcmask 31744  }
  0x2d   :  { %v53_v12 = vsub.f32 1.0, %v52_v11  ;;  %485 = vmatpush3.msk.msra.mxu1 %vm202_vm7, %v188_v34  ;;  %s632_s3 = smov 97   ;;  %v460_v49 = vld [vmem:[%s808_s4] ss:$0 sm:$0xff]  ;;  %vm412_vm10 = vcmask 1041408   ;;  %vm414_vm11 = vcmask 1042432  }
  0x2e   :  { %vm417_vm12 = vcmask 1044480   ;;  %vm419_vm13 = vcmask 1045504   ;;  %s633_s4 = smov [#allocation8]   ;;  %s634_s9 = smov [#allocation7]   ;;  %vm421_vm14 = vcmask 1046528   ;;  %vm424_vm15 = vcmask 261127  }
  0x2f   :  { %494 = vmatpush3.bf16.msra.mxu0 %v493_v8  ;;  %511 = vrcp.f32 %v53_v12  ;;  %s442_s8 = sshll.u32 %s633_s4, 4  ;;  %s432_s10 = sshll.u32 %s634_s9, 4  ;;  %s443_s8 = int_to_ptr.vmem [resolvable:$true] %s442_s8  ;;  %s772_s10 = int_to_ptr.vmem [resolvable:$true] %s432_s10 }
  0x30   :  { %479 = vmatprep.subr.mxu0 %v625_v1  ;;  %s567_s11 = scalar_lea.vmem %s443_s8, 16  ;;  %s571_s12 = scalar_lea.vmem %s443_s8, 32 }
  0x31   :  { %p568_p2 = scmp.ne.s32.totalorder %s443_s8, %s567_s11  ;;  %p572_p3 = scmp.lt.s32.totalorder %s443_s8, %s443_s8 }
  0x32   :  { %v288_v29 = vld [vmem:[#allocation8] sm:$0x1]  ;;  %p573_p4 = scmp.lt.s32.totalorder %s571_s12, %s567_s11 }
  0x33   :  { %480 = vmatpush3.msk.msra.mxu0 %vm75_vm1, %v70_v9 }
  0x34   :  { %p574_p5 = por %p573_p4, %p572_p3 }
  0x36   :  { %p575_p6 = pnand %p574_p5, %p568_p2 }
  0x39   :  { %v512_v13 = vpop.eup %511 }
  0x3a   :  { %v55_v14 = vmul.f32 %v512_v13, %v52_v11 }
  0x3c   :  { %513 = vlog2.f32 %v55_v14 }
  0x46   :  { %v514_v15 = vpop.eup %513 }
  0x47   :  { %v57_v16 = vmul.f32 0.6931472, %v514_v15 }
  0x9c   :  { %v60_v17 = vpop.permute.xlu0 %59 }
  0x9d   :  { %v63_v18 = vsel %vm62_vm2, %v57_v16, %v60_v17 }
  0x9e   :  { %v65_v19 = vsel %vm64_vm3, %v63_v18, 1.0 }
  0x9f   :  { %482 = vmatmul.mubr.msk.f32.vlgmr.msra.gmra.mrb[0].mxu0 %vm71_vm4, %v65_v19 }
 0x172   :  { %v145_v21 = vpop.f32.mrb[0].mxu0 }
 0x173   :  { %160 = vrot.lane.b32.xlu1 %v145_v21, %s626_s22  ;;  %157 = vrot.lane.b32.xlu0 %v145_v21, %s627_s24  ;;  %v483_v22 = vpop.f32.mrb[1].mxu0  ;;  %v458_v23 = vmul.f32 -1.442695, %v145_v21  ;;  %vm155_vm6 = vcmp.gt.f32.partialorder %v145_v21, 0.0 }
 0x175   :  { %515 = vpow2.f32 %v458_v23 }
 0x177   :  { %164 = vrot.lane.b32.xlu1 %v145_v21, %s628_s25  ;;  %167 = vrot.lane.b32.xlu0 %v145_v21, %s622_s19 }
 0x17f   :  { %v516_v24 = vpop.eup %515 }
 0x180   :  { %v152_v25 = vadd.f32 1.0, %v516_v24 }
 0x182   :  { %517 = vrcp.f32 %v152_v25 }
 0x18c   :  { %v518_v33 = vpop.eup %517 }
 0x1e5   :  { %v161_v26 = vpop.permute.xlu1 %160  ;;  %v158_v27 = vpop.permute.xlu0 %157 }
 0x1e6   :  { %v163_v28 = vsel %vm155_vm6, %v158_v27, %v161_v26 }
 0x1e7   :  { %176 = vrot.lane.b32.xlu0 %v163_v28, %s628_s25 }
 0x1e9   :  { %v165_v30 = vpop.permute.xlu1 %164  ;;  %v168_v31 = vpop.permute.xlu0 %167 }
 0x1ea   :  { %v170_v32 = vsel %vm155_vm6, %v165_v30, %v168_v31 }
 0x1eb   :  { %172 = vrot.lane.b32.xlu1 %v170_v32, %s628_s25  ;;  %290 = vrot.lane.b32.xlu0 %v288_v29, %s629_s1 }
 0x1ef   :  { %277 = vrot.lane.b32.xlu0 %v518_v33, %s630_s26 }
 0x259   :  { %v177_v35 = vpop.permute.xlu0 %176 }
 0x25d   :  { %v173_v36 = vpop.permute.xlu1 %172  ;;  %v291_v44 = vpop.permute.xlu0 %290 }
 0x25e   :  { %v179_v37 = vsel %vm155_vm6, %v173_v36, %v177_v35  ;;  %v292_v45 = vsel %vm289_vm8, %v291_v44, %v288_v29 }
 0x25f   :  { %v459_v38 = vmul.f32 -1.442695, %v179_v37 }
 0x261   :  { %519 = vpow2.f32 %v459_v38  ;;  %v278_v53 = vpop.permute.xlu0 %277 }
 0x26b   :  { %v520_v39 = vpop.eup %519 }
 0x26c   :  { %v183_v40 = vadd.f32 1.0, %v520_v39 }
 0x26e   :  { %521 = vrcp.f32 %v183_v40 }
 0x278   :  { %v522_v41 = vpop.eup %521 }
 0x279   :  { %v186_v42 = vmax.f32 %v522_v41, 0.001 }
 0x27b   :  { %v187_v43 = vmin.f32 %v186_v42, 0.999 }
 0x27d   :  { %197 = vrot.lane.b32.xlu1 %v187_v43, %s631_s29 }
 0x281   :  { %293 = vrot.lane.b32.xlu1 %v292_v45, %s629_s1 }
 0x2ef   :  { %v198_v46 = vpop.permute.xlu1 %197 }
 0x2f0   :  { %487 = vmatmul.mubr.msk.f32.vlgmr.msra.gmra.mrb[0].mxu1 %vm199_vm9, %v198_v46 }
 0x2f3   :  { %v294_v47 = vpop.permute.xlu1 %293 }
 0x2f4   :  { %v295_v48 = vsel %vm289_vm8, %v294_v47, %v288_v29 }
 0x2f5   :  { %297 = vrot.lane.b32.xlu1 %v295_v48, %s632_s3 }
 0x367   :  { %v298_v54 = vpop.permute.xlu1 %297 }
 0x3c3   :  { %v272_v50 = vpop.f32.mrb[0].mxu1 }
 0x3c4   :  { %v273_v51 = vadd.f32 %v460_v49, %v272_v50  ;;  %v488_v52 = vpop.f32.mrb[1].mxu1 }
 0x3c6   :  { %v725_v55 = vmul.f32 %v278_v53, %v273_v51 }
 0x3c8   :  { %v300_v56 = vadd.f32 %v298_v54, %v725_v55 }
 0x3ca   :  { %v301_v57 = vmax.f32 %v300_v56, 0.0 }
 0x3cc   :  { %302 = vrot.lane.b32.xlu0 %v301_v57, %s629_s1 }
 0x43e   :  { %v303_v58 = vpop.permute.xlu0 %302 }
 0x43f   :  { %v304_v59 = vsel %vm289_vm8, %v303_v58, %v301_v57 }
 0x440   :  { %305 = vrot.lane.b32.xlu1 %v304_v59, %s629_s1 }
 0x4b2   :  { %v306_v60 = vpop.permute.xlu1 %305 }
 0x4b3   :  { %v307_v61 = vsel %vm289_vm8, %v306_v60, %v301_v57 }
 0x4b4   :  { %v309_v62 = vrot.slane %v307_v61, 7 }
 0x4b6   :  { %310 = vrot.lane.b32.xlu0 %v309_v62, %s632_s3 }
 0x528   :  { %v311_v63 = vpop.permute.xlu0 %310 }
 0x529   :  { %v313_v0 = vadd.f32 %v311_v63, %v725_v55 }
 0x52b   :  { %v314_v1 = vmax.f32 %v313_v0, 0.0 }
 0x52d   :  { %v316_v2 = vrot.slane %v314_v1, 1  ;;  %v411_v11 = vsel %vm75_vm1, %v301_v57, %v314_v1 }
 0x52f   :  { %318 = vrot.lane.b32.xlu1 %v316_v2, %s629_s1 }
 0x5a1   :  { %v319_v3 = vpop.permute.xlu1 %318 }
 0x5a2   :  { %v320_v4 = vsel %vm289_vm8, %v319_v3, %v316_v2 }
 0x5a3   :  { %321 = vrot.lane.b32.xlu0 %v320_v4, %s629_s1 }
 0x615   :  { %v322_v5 = vpop.permute.xlu0 %321 }
 0x616   :  { %v323_v6 = vsel %vm289_vm8, %v322_v5, %v316_v2 }
 0x617   :  { %v325_v7 = vrot.slane %v323_v6, 6 }
 0x619   :  { %326 = vrot.lane.b32.xlu1 %v325_v7, %s632_s3 }
 0x68b   :  { %v327_v8 = vpop.permute.xlu1 %326 }
 0x68c   :  { %v329_v9 = vadd.f32 %v327_v8, %v725_v55 }
 0x68e   :  { %v330_v10 = vmax.f32 %v329_v9, 0.0 }
 0x690   :  { %v332_v12 = vrot.slane %v330_v10, 2  ;;  %v413_v13 = vsel %vm412_vm10, %v411_v11, %v330_v10 }
 0x692   :  { %334 = vrot.lane.b32.xlu0 %v332_v12, %s629_s1 }
 0x704   :  { %v335_v14 = vpop.permute.xlu0 %334 }
 0x705   :  { %v336_v15 = vsel %vm289_vm8, %v335_v14, %v332_v12 }
 0x706   :  { %337 = vrot.lane.b32.xlu1 %v336_v15, %s629_s1 }
 0x778   :  { %v338_v16 = vpop.permute.xlu1 %337 }
 0x779   :  { %v339_v17 = vsel %vm289_vm8, %v338_v16, %v332_v12 }
 0x77a   :  { %v341_v18 = vrot.slane %v339_v17, 5 }
 0x77c   :  { %342 = vrot.lane.b32.xlu0 %v341_v18, %s632_s3 }
 0x7ee   :  { %v343_v19 = vpop.permute.xlu0 %342 }
 0x7ef   :  { %v345_v20 = vadd.f32 %v343_v19, %v725_v55 }
 0x7f1   :  { %v346_v21 = vmax.f32 %v345_v20, 0.0 }
 0x7f3   :  { %v348_v22 = vrot.slane %v346_v21, 3  ;;  %v415_v23 = vsel %vm414_vm11, %v413_v13, %v346_v21 }
 0x7f5   :  { %350 = vrot.lane.b32.xlu1 %v348_v22, %s629_s1 }
 0x867   :  { %v351_v24 = vpop.permute.xlu1 %350 }
 0x868   :  { %v352_v25 = vsel %vm289_vm8, %v351_v24, %v348_v22 }
 0x869   :  { %353 = vrot.lane.b32.xlu0 %v352_v25, %s629_s1 }
 0x8db   :  { %v354_v26 = vpop.permute.xlu0 %353 }
 0x8dc   :  { %v355_v27 = vsel %vm289_vm8, %v354_v26, %v348_v22 }
 0x8dd   :  { %v357_v28 = vrot.slane %v355_v27, 4 }
 0x8df   :  { %358 = vrot.lane.b32.xlu1 %v357_v28, %s632_s3 }
 0x951   :  { %v359_v29 = vpop.permute.xlu1 %358 }
 0x952   :  { %v361_v30 = vadd.f32 %v359_v29, %v725_v55 }
 0x954   :  { %v362_v31 = vmax.f32 %v361_v30, 0.0 }
 0x956   :  { %v364_v32 = vrot.slane %v362_v31, 4  ;;  %v416_v33 = vsel %vm202_vm7, %v415_v23, %v362_v31 }
 0x958   :  { %366 = vrot.lane.b32.xlu0 %v364_v32, %s629_s1 }
 0x9ca   :  { %v367_v34 = vpop.permute.xlu0 %366 }
 0x9cb   :  { %v368_v35 = vsel %vm289_vm8, %v367_v34, %v364_v32 }
 0x9cc   :  { %369 = vrot.lane.b32.xlu1 %v368_v35, %s629_s1 }
 0xa3e   :  { %v370_v36 = vpop.permute.xlu1 %369 }
 0xa3f   :  { %v371_v37 = vsel %vm289_vm8, %v370_v36, %v364_v32 }
 0xa40   :  { %v373_v38 = vrot.slane %v371_v37, 3 }
 0xa42   :  { %374 = vrot.lane.b32.xlu0 %v373_v38, %s632_s3 }
 0xab4   :  { %v375_v39 = vpop.permute.xlu0 %374 }
 0xab5   :  { %v377_v40 = vadd.f32 %v375_v39, %v725_v55 }
 0xab7   :  { %v378_v41 = vmax.f32 %v377_v40, 0.0 }
 0xab9   :  { %v380_v42 = vrot.slane %v378_v41, 5  ;;  %v418_v43 = vsel %vm417_vm12, %v416_v33, %v378_v41 }
 0xabb   :  { %382 = vrot.lane.b32.xlu1 %v380_v42, %s629_s1 }
 0xb2d   :  { %v383_v44 = vpop.permute.xlu1 %382 }
 0xb2e   :  { %v384_v45 = vsel %vm289_vm8, %v383_v44, %v380_v42 }
 0xb2f   :  { %385 = vrot.lane.b32.xlu0 %v384_v45, %s629_s1 }
 0xba1   :  { %v386_v46 = vpop.permute.xlu0 %385 }
 0xba2   :  { %v387_v47 = vsel %vm289_vm8, %v386_v46, %v380_v42 }
 0xba3   :  { %v389_v48 = vrot.slane %v387_v47, 2 }
 0xba5   :  { %390 = vrot.lane.b32.xlu1 %v389_v48, %s632_s3 }
 0xc17   :  { %v391_v49 = vpop.permute.xlu1 %390 }
 0xc18   :  { %v393_v50 = vadd.f32 %v391_v49, %v725_v55 }
 0xc1a   :  { %v394_v51 = vmax.f32 %v393_v50, 0.0 }
 0xc1c   :  { %v396_v52 = vrot.slane %v394_v51, 6  ;;  %v420_v53 = vsel %vm419_vm13, %v418_v43, %v394_v51 }
 0xc1e   :  { %398 = vrot.lane.b32.xlu0 %v396_v52, %s629_s1 }
 0xc90   :  { %v399_v54 = vpop.permute.xlu0 %398 }
 0xc91   :  { %v400_v56 = vsel %vm289_vm8, %v399_v54, %v396_v52 }
 0xc92   :  { %401 = vrot.lane.b32.xlu1 %v400_v56, %s629_s1 }
 0xd04   :  { %v402_v57 = vpop.permute.xlu1 %401 }
 0xd05   :  { %v403_v58 = vsel %vm289_vm8, %v402_v57, %v396_v52 }
 0xd06   :  { %v405_v59 = vrot.slane %v403_v58, 1 }
 0xd08   :  { %406 = vrot.lane.b32.xlu0 %v405_v59, %s632_s3 }
 0xd7a   :  { %v407_v60 = vpop.permute.xlu0 %406 }
 0xd7b   :  { %v409_v61 = vadd.f32 %v407_v60, %v725_v55 }
 0xd7d   :  { %v410_v62 = vmax.f32 %v409_v61, 0.0 }
 0xd7f   :  { %v422_v63 = vsel %vm421_vm14, %v420_v53, %v410_v62  ;;  %425 = vst.msk [vmem:[#allocation8 - $0x7] sm:$0x80] %vm424_vm15, %v410_v62 }
 0xd80   :  { %423 = vst.msk [vmem:[#allocation7] sm:$0xff] %vm64_vm3, %v422_v63 }
 0xd81   :  { %578 = shalt.err (!%p575_p6)
}
 0xd82   :  { %s579_s15 = scalar_lea.hbm %s810_s6, 16 }
 0xd83   :  { %p580_p7 = scmp.ne.s32.totalorder %s810_s6, %s579_s15  ;;  %p583_p8 = scmp.lt.u32.totalorder %s579_s15, %s810_s6 }
 0xd85   :  { %p585_p9 = pnand %p583_p8, %p580_p7 }
 0xd87   :  { %588 = shalt.err (!%p585_p9)
}
 0xd88   :  { %445 = dma.vmem_to_hbm [thread:$0]  %s443_s8, 16, %s810_s6, [#allocation9]  }
 0xd89   :  { %s589_s21 = scalar_lea.vmem %s772_s10, 128  ;;  %p594_p11 = scmp.lt.s32.totalorder %s772_s10, %s772_s10 }
 0xd8a   :  { %p590_p10 = scmp.ne.s32.totalorder %s772_s10, %s589_s21  ;;  %p595_p12 = scmp.lt.s32.totalorder %s589_s21, %s589_s21 }
 0xd8c   :  { %p596_p13 = por %p595_p12, %p594_p11 }
 0xd8e   :  { %p597_p0 = pnand %p596_p13, %p590_p10 }
 0xd90   :  { %600 = shalt.err (!%p597_p0)
}
 0xd91   :  { %s601_s23 = scalar_lea.hbm %s809_s5, 128 }
 0xd92   :  { %p602_p1 = scmp.ne.s32.totalorder %s809_s5, %s601_s23  ;;  %p605_p2 = scmp.lt.u32.totalorder %s601_s23, %s809_s5 }
 0xd94   :  { %p607_p3 = pnand %p605_p2, %p602_p1 }
 0xd96   :  { %610 = shalt.err (!%p607_p3)
}
 0xd97   :  { %435 = dma.vmem_to_hbm [thread:$0]  %s772_s10, 128, %s809_s5, [#allocation4]  }
 0xd98   :  { %615 = dma.done.wait [#allocation4], 128  }
 0xd99   :  { %616 = vsyncadd [#allocation4], 4294967168 }
 0xd9a   :  { %617 = dma.done.wait [#allocation9], 16  }
 0xd9b   :  { %618 = vsyncadd [#allocation9], 4294967280 }
 0xd9c   :  { %452 = vsyncpa [#allocation3], 1 }
 0xd9d   :  { %453 = vsyncpa [#allocation6], 1 }
 0xd9e   :  { %454 = vsyncpa [#allocation4], 1 }
 0xd9f   :  { %455 = vsyncpa [#allocation9], 1 }

</bundles_post_ra>
